<compile_context>
chip_gen: v6e
topology: v6e:2x2x1
jax: 0.10.0
libtpu: 0.0.40
codegen_flags: <defaults>
</compile_context>

<pallas_src>
import functools

import jax
import jax.numpy as jnp
from jax.experimental import pallas as pl
from jax.experimental.pallas import tpu as pltpu

INPUT_DIM = 28 * 28      # 784
OUTPUT_DIM = 10
LANE = 128               # pad hidden/output feature dims to a full lane width
NEG_BIG = -1e30


def _round_up(x, m):
    return ((x + m - 1) // m) * m


def _activation(name):
    if name == "tanh":
        return jnp.tanh
    if name == "linear":
        return lambda h: h
    if name == "relu":
        return lambda h: jnp.maximum(h, 0.0)
    if name == "selu":
        alpha, scale = 1.6732632423543772, 1.0507009873554805
        return lambda h: scale * jnp.where(h > 0, h, alpha * (jnp.exp(h) - 1.0))
    if name == "hard_tanh":
        return lambda h: jnp.clip(h, -1.0, 1.0)
    raise ValueError("Unknown activation")


def _bf16_act_supported():
    """bf16 VPU/EUP exists on v6e/v7x; keep f32 activations elsewhere (v5e)."""
    try:
        kind = jax.devices()[0].device_kind.lower()
    except Exception:
        return False
    return ("v6" in kind) or ("v7" in kind)


def _mlp_kernel(x_ref, w1_ref, b1_ref, wr_ref, br_ref, out_ref, *,
                depth: int, actv_fn: str, last: str, act_bf16: bool):
    act = _activation(actv_fn)

    def post(h_f32):
        # Activation in bf16 on bf16-capable VPU/EUP (v6e/v7x), else f32.
        if act_bf16:
            return act(h_f32.astype(jnp.bfloat16))
        return act(h_f32).astype(jnp.bfloat16)

    # fc1: cast f32 x tile -> bf16 in VMEM, (tb,784)bf16 @ (784,128)bf16,
    # accumulate f32 on the MXU.
    xb = x_ref[...].astype(jnp.bfloat16)
    h = jnp.dot(xb, w1_ref[...], preferred_element_type=jnp.float32)
    h = post(h + b1_ref[...])

    # hidden layers 2 .. depth-1 (static unrolled loop over the stacked ref).
    for i in range(depth - 2):
        h = jnp.dot(h, wr_ref[i], preferred_element_type=jnp.float32)
        h = post(h + br_ref[i])

    # final layer: no activation.  Padded output lanes carry a -1e30 bias
    # (baked at prep time) so logsoftmax needs no explicit mask.
    logits = jnp.dot(h, wr_ref[depth - 2],
                     preferred_element_type=jnp.float32) + br_ref[depth - 2]

    if last == "logsoftmax":
        m = jnp.max(logits, axis=-1, keepdims=True)
        lse = jnp.log(jnp.sum(jnp.exp(logits - m), axis=-1, keepdims=True)) + m
        out_ref[...] = (logits - lse).astype(out_ref.dtype)
    else:                      # last == "logits": skip exp / reduction.
        out_ref[...] = logits.astype(out_ref.dtype)


def init_params(key, in_dim=INPUT_DIM, out_dim=OUTPUT_DIM, depth=7, width=100):
    """nn.Linear-style init: U(-1/sqrt(fan_in), 1/sqrt(fan_in)); W stored (in, out)."""
    dims = [in_dim] + [width] * (depth - 1) + [out_dim]
    keys = jax.random.split(key, depth)
    params = []
    for k, di, do in zip(keys, dims[:-1], dims[1:]):
        kw, kb = jax.random.split(k)
        bound = 1.0 / (di ** 0.5)
        w = jax.random.uniform(kw, (di, do), jnp.float32, -bound, bound)
        b = jax.random.uniform(kb, (do,), jnp.float32, -bound, bound)
        params.append((w, b))
    return params


def prepare_params(params, lane=LANE):
    """One-time prep (keep OFF the per-step path): pad feature dims to 128
    lanes, stack the equal-shaped layers, cast weights to bf16.  The final
    layer's padded bias lanes are set to -1e30 so padded classes vanish from
    logsumexp without an in-kernel mask."""
    assert len(params) >= 2, "kernel assumes depth >= 2"
    w1, b1 = params[0]
    in_dim, width = w1.shape
    wpad = _round_up(width, lane)

    w1p = (jnp.zeros((in_dim, wpad), jnp.float32).at[:, :width].set(w1)
           .astype(jnp.bfloat16))
    b1p = jnp.zeros((1, wpad), jnp.float32).at[0, :width].set(b1)

    wr, br = [], []
    n = len(params)
    for li, (w, b) in enumerate(params[1:], start=1):
        di, do = w.shape
        dop = _round_up(do, lane)
        assert dop == wpad, "stacking requires equal padded widths"
        wr.append(jnp.zeros((wpad, wpad), jnp.float32).at[:di, :do].set(w))
        fill = NEG_BIG if li == n - 1 else 0.0     # bake padded-class mask
        br.append(jnp.full((1, wpad), fill, jnp.float32).at[0, :do].set(b))
    wr = jnp.stack(wr).astype(jnp.bfloat16)    # (depth-1, wpad, wpad) bf16
    br = jnp.stack(br)                         # (depth-1, 1, wpad)  f32
    return w1p, b1p, wr, br


def mlp_forward(x, prepared, *, actv_fn="tanh", last="logits",
                output=OUTPUT_DIM, tile_b=1024, act_bf16=None):
    assert last in ("logits", "logsoftmax")
    w1p, b1p, wr, br = prepared
    depth = int(wr.shape[0]) + 1
    assert depth >= 2
    in_dim, wpad = w1p.shape
    if act_bf16 is None:
        act_bf16 = _bf16_act_supported()

    # == x.view(-1, 28*28); NO dtype cast or batch pad here (no extra HBM pass).
    xf = x.reshape(-1, in_dim)
    B = xf.shape[0]

    # Batch tiling: big tiles (HBM roofline), sublane-aligned, and at least 2
    # grid steps when the batch allows so both v7x TensorCores get work.
    tb = max(8, min(tile_b, _round_up(pl.cdiv(B, 2), 8)))
    grid = (pl.cdiv(B, tb),)                 # ragged last tile; rows independent

    # VMEM budget: double-buffered x/out tiles + resident weights + headroom,
    # clamped to 32 MiB (fits v7x's 64 MiB/TC; above v5e's 16 MiB default).
    weight_bytes = (w1p.size + wr.size) * 2 + (b1p.size + br.size) * 4
    tile_bytes = tb * in_dim * xf.dtype.itemsize + tb * wpad * 2
    vmem_limit = int(min(max(2 * weight_bytes + 3 * tile_bytes + (4 << 20),
                             16 << 20), 32 << 20))

    kernel = functools.partial(_mlp_kernel, depth=depth, actv_fn=actv_fn,
                               last=last, act_bf16=act_bf16)

    out_padded = pl.pallas_call(
        kernel,
        out_shape=jax.ShapeDtypeStruct((B, wpad), jnp.bfloat16),   # bf16 store
        grid=grid,
        in_specs=[
            pl.BlockSpec((tb, in_dim), lambda i: (i, 0)),             # x tile (f32)
            pl.BlockSpec((in_dim, wpad), lambda i: (0, 0)),           # w1 (resident)
            pl.BlockSpec((1, wpad), lambda i: (0, 0)),                # b1
            pl.BlockSpec((depth - 1, wpad, wpad), lambda i: (0, 0, 0)),  # stacked W
            pl.BlockSpec((depth - 1, 1, wpad), lambda i: (0, 0, 0)),     # stacked b
        ],
        out_specs=pl.BlockSpec((tb, wpad), lambda i: (i, 0)),
        compiler_params=pltpu.CompilerParams(
            dimension_semantics=("parallel",),      # shard batch tiles across TCs
            vmem_limit_bytes=vmem_limit,
        ),
    )(xf, w1p, b1p, wr, br)

    # Slice off padded classes (and any ragged-tile rows never exist past B),
    # return f32 for downstream consumers.
    return out_padded[:B, :output].astype(jnp.float32)


def reference_forward(x, params, *, actv_fn="tanh", last="logits", act_bf16=False):
    """Pure-JAX reference with matching bf16-weight / f32-accumulate math."""
    act = _activation(actv_fn)
    h = x.reshape(-1, params[0][0].shape[0])
    n = len(params)
    for li, (w, b) in enumerate(params):
        h = jnp.dot(h.astype(jnp.bfloat16), w.astype(jnp.bfloat16),
                    preferred_element_type=jnp.float32) + b
        if li < n - 1:
            if act_bf16:
                h = act(h.astype(jnp.bfloat16)).astype(jnp.float32)
            else:
                h = act(h)
    return jax.nn.log_softmax(h, axis=-1) if last == "logsoftmax" else h


if __name__ == "__main__":
    key = jax.random.PRNGKey(0)
    kx, kx2, kp = jax.random.split(key, 3)

    B, depth, width = 2, 7, 100
    x = jax.random.normal(kx, (B, 1, 28, 28), dtype=jnp.float32)   # MNIST-shaped

    params = init_params(kp, INPUT_DIM, OUTPUT_DIM, depth, width)
    prepared = prepare_params(params)
    act_bf16 = _bf16_act_supported()

    # Module default: last='logits'
    logits = mlp_forward(x, prepared, actv_fn="tanh", last="logits",
                         act_bf16=act_bf16)
    logits = jax.block_until_ready(logits)
    assert logits.shape == (B, OUTPUT_DIM)
    assert bool(jnp.all(jnp.isfinite(logits)))
    ref = reference_forward(x, params, actv_fn="tanh", last="logits",
                            act_bf16=act_bf16)
    assert bool(jnp.allclose(logits, ref, atol=3e-2, rtol=3e-2))

    # last='logsoftmax' path.
    logp = mlp_forward(x, prepared, actv_fn="tanh", last="logsoftmax",
                       act_bf16=act_bf16)
    logp = jax.block_until_ready(logp)
    assert logp.shape == (B, OUTPUT_DIM)
    assert bool(jnp.all(jnp.isfinite(logp)))
    assert bool(jnp.allclose(jnp.exp(logp).sum(axis=1), 1.0, atol=2e-2))
    refp = reference_forward(x, params, actv_fn="tanh", last="logsoftmax",
                             act_bf16=act_bf16)
    assert bool(jnp.allclose(logp, refp, atol=5e-2, rtol=5e-2))

    # Ragged multi-step grid path (megacore split + partial last batch tile).
    B2 = 33
    x2 = jax.random.normal(kx2, (B2, 1, 28, 28), dtype=jnp.float32)
    out2 = mlp_forward(x2, prepared, actv_fn="tanh", last="logits",
                       tile_b=16, act_bf16=act_bf16)
    out2 = jax.block_until_ready(out2)
    assert out2.shape == (B2, OUTPUT_DIM)
    ref2 = reference_forward(x2, params, actv_fn="tanh", last="logits",
                             act_bf16=act_bf16)
    assert bool(jnp.allclose(out2, ref2, atol=3e-2, rtol=3e-2))

    print("KERNEL_OK")
</pallas_src>

<mosaic_0001>
module attributes {stable_mosaic.version = 11 : i64} {
  func.func @_mlp_kernel(%arg0: i32, %arg1: memref<8x784xf32, #tpu.memory_space<vmem>>, %arg2: memref<784x128xbf16, #tpu.memory_space<vmem>>, %arg3: memref<1x128xf32, #tpu.memory_space<vmem>>, %arg4: memref<6x128x128xbf16, #tpu.memory_space<vmem>>, %arg5: memref<6x1x128xf32, #tpu.memory_space<vmem>>, %arg6: memref<8x128xbf16, #tpu.memory_space<vmem>>) attributes {dimension_semantics = [#tpu.dimension_semantics<parallel>], iteration_bounds = array<i64: 1>, scalar_prefetch = 0 : i64, scratch_operands = 0 : i64, tpu.core_type = #tpu.core_type<tc>, window_params = [{transform_indices = @transform_0, window_bounds = array<i64: 8, 784>}, {pipeline_mode = #tpu.pipeline_mode<synchronous>, transform_indices = @transform_1, window_bounds = array<i64: 784, 128>}, {pipeline_mode = #tpu.pipeline_mode<synchronous>, transform_indices = @transform_2, window_bounds = array<i64: 1, 128>}, {pipeline_mode = #tpu.pipeline_mode<synchronous>, transform_indices = @transform_3, window_bounds = array<i64: 6, 128, 128>}, {pipeline_mode = #tpu.pipeline_mode<synchronous>, transform_indices = @transform_4, window_bounds = array<i64: 6, 1, 128>}, {transform_indices = @transform_5, window_bounds = array<i64: 8, 128>}]} {
    %c0 = arith.constant 0 : index
    %c0_0 = arith.constant 0 : index
    %0 = vector.load %arg1[%c0, %c0_0] : memref<8x784xf32, #tpu.memory_space<vmem>>, vector<8x784xf32>
    %1 = arith.truncf %0 : vector<8x784xf32> to vector<8x784xbf16>
    %c0_1 = arith.constant 0 : index
    %c0_2 = arith.constant 0 : index
    %2 = vector.load %arg2[%c0_1, %c0_2] : memref<784x128xbf16, #tpu.memory_space<vmem>>, vector<784x128xbf16>
    %cst = arith.constant dense<0.000000e+00> : vector<8x128xf32>
    %3 = tpu.matmul %1, %2, %cst {dimension_numbers = #tpu.dot_dimension_numbers<[1], [0], [0], [1], [0, 0, 1, 1], [], []>} : vector<8x784xbf16>, vector<784x128xbf16>, vector<8x128xf32> -> vector<8x128xf32>
    %c0_3 = arith.constant 0 : index
    %c0_4 = arith.constant 0 : index
    %4 = vector.load %arg3[%c0_3, %c0_4] : memref<1x128xf32, #tpu.memory_space<vmem>>, vector<1x128xf32>
    %5 = vector.broadcast %4 : vector<1x128xf32> to vector<8x128xf32>
    %6 = arith.addf %3, %5 : vector<8x128xf32>
    %7 = math.tanh %6 : vector<8x128xf32>
    %8 = arith.truncf %7 : vector<8x128xf32> to vector<8x128xbf16>
    %c0_5 = arith.constant 0 : index
    %c0_6 = arith.constant 0 : index
    %c0_7 = arith.constant 0 : index
    %9 = vector.load %arg4[%c0_5, %c0_6, %c0_7] : memref<6x128x128xbf16, #tpu.memory_space<vmem>>, vector<1x128x128xbf16>
    %10 = vector.shape_cast %9 : vector<1x128x128xbf16> to vector<128x128xbf16>
    %cst_8 = arith.constant dense<0.000000e+00> : vector<8x128xf32>
    %11 = tpu.matmul %8, %10, %cst_8 {dimension_numbers = #tpu.dot_dimension_numbers<[1], [0], [0], [1], [0, 0, 1, 1], [], []>} : vector<8x128xbf16>, vector<128x128xbf16>, vector<8x128xf32> -> vector<8x128xf32>
    %c0_9 = arith.constant 0 : index
    %c0_10 = arith.constant 0 : index
    %c0_11 = arith.constant 0 : index
    %12 = vector.load %arg5[%c0_9, %c0_10, %c0_11] : memref<6x1x128xf32, #tpu.memory_space<vmem>>, vector<1x1x128xf32>
    %13 = vector.shape_cast %12 : vector<1x1x128xf32> to vector<1x128xf32>
    %14 = vector.broadcast %13 : vector<1x128xf32> to vector<8x128xf32>
    %15 = arith.addf %11, %14 : vector<8x128xf32>
    %16 = math.tanh %15 : vector<8x128xf32>
    %17 = arith.truncf %16 : vector<8x128xf32> to vector<8x128xbf16>
    %c1 = arith.constant 1 : index
    %c0_12 = arith.constant 0 : index
    %c0_13 = arith.constant 0 : index
    %18 = vector.load %arg4[%c1, %c0_12, %c0_13] : memref<6x128x128xbf16, #tpu.memory_space<vmem>>, vector<1x128x128xbf16>
    %19 = vector.shape_cast %18 : vector<1x128x128xbf16> to vector<128x128xbf16>
    %cst_14 = arith.constant dense<0.000000e+00> : vector<8x128xf32>
    %20 = tpu.matmul %17, %19, %cst_14 {dimension_numbers = #tpu.dot_dimension_numbers<[1], [0], [0], [1], [0, 0, 1, 1], [], []>} : vector<8x128xbf16>, vector<128x128xbf16>, vector<8x128xf32> -> vector<8x128xf32>
    %c1_15 = arith.constant 1 : index
    %c0_16 = arith.constant 0 : index
    %c0_17 = arith.constant 0 : index
    %21 = vector.load %arg5[%c1_15, %c0_16, %c0_17] : memref<6x1x128xf32, #tpu.memory_space<vmem>>, vector<1x1x128xf32>
    %22 = vector.shape_cast %21 : vector<1x1x128xf32> to vector<1x128xf32>
    %23 = vector.broadcast %22 : vector<1x128xf32> to vector<8x128xf32>
    %24 = arith.addf %20, %23 : vector<8x128xf32>
    %25 = math.tanh %24 : vector<8x128xf32>
    %26 = arith.truncf %25 : vector<8x128xf32> to vector<8x128xbf16>
    %c2 = arith.constant 2 : index
    %c0_18 = arith.constant 0 : index
    %c0_19 = arith.constant 0 : index
    %27 = vector.load %arg4[%c2, %c0_18, %c0_19] : memref<6x128x128xbf16, #tpu.memory_space<vmem>>, vector<1x128x128xbf16>
    %28 = vector.shape_cast %27 : vector<1x128x128xbf16> to vector<128x128xbf16>
    %cst_20 = arith.constant dense<0.000000e+00> : vector<8x128xf32>
    %29 = tpu.matmul %26, %28, %cst_20 {dimension_numbers = #tpu.dot_dimension_numbers<[1], [0], [0], [1], [0, 0, 1, 1], [], []>} : vector<8x128xbf16>, vector<128x128xbf16>, vector<8x128xf32> -> vector<8x128xf32>
    %c2_21 = arith.constant 2 : index
    %c0_22 = arith.constant 0 : index
    %c0_23 = arith.constant 0 : index
    %30 = vector.load %arg5[%c2_21, %c0_22, %c0_23] : memref<6x1x128xf32, #tpu.memory_space<vmem>>, vector<1x1x128xf32>
    %31 = vector.shape_cast %30 : vector<1x1x128xf32> to vector<1x128xf32>
    %32 = vector.broadcast %31 : vector<1x128xf32> to vector<8x128xf32>
    %33 = arith.addf %29, %32 : vector<8x128xf32>
    %34 = math.tanh %33 : vector<8x128xf32>
    %35 = arith.truncf %34 : vector<8x128xf32> to vector<8x128xbf16>
    %c3 = arith.constant 3 : index
    %c0_24 = arith.constant 0 : index
    %c0_25 = arith.constant 0 : index
    %36 = vector.load %arg4[%c3, %c0_24, %c0_25] : memref<6x128x128xbf16, #tpu.memory_space<vmem>>, vector<1x128x128xbf16>
    %37 = vector.shape_cast %36 : vector<1x128x128xbf16> to vector<128x128xbf16>
    %cst_26 = arith.constant dense<0.000000e+00> : vector<8x128xf32>
    %38 = tpu.matmul %35, %37, %cst_26 {dimension_numbers = #tpu.dot_dimension_numbers<[1], [0], [0], [1], [0, 0, 1, 1], [], []>} : vector<8x128xbf16>, vector<128x128xbf16>, vector<8x128xf32> -> vector<8x128xf32>
    %c3_27 = arith.constant 3 : index
    %c0_28 = arith.constant 0 : index
    %c0_29 = arith.constant 0 : index
    %39 = vector.load %arg5[%c3_27, %c0_28, %c0_29] : memref<6x1x128xf32, #tpu.memory_space<vmem>>, vector<1x1x128xf32>
    %40 = vector.shape_cast %39 : vector<1x1x128xf32> to vector<1x128xf32>
    %41 = vector.broadcast %40 : vector<1x128xf32> to vector<8x128xf32>
    %42 = arith.addf %38, %41 : vector<8x128xf32>
    %43 = math.tanh %42 : vector<8x128xf32>
    %44 = arith.truncf %43 : vector<8x128xf32> to vector<8x128xbf16>
    %c4 = arith.constant 4 : index
    %c0_30 = arith.constant 0 : index
    %c0_31 = arith.constant 0 : index
    %45 = vector.load %arg4[%c4, %c0_30, %c0_31] : memref<6x128x128xbf16, #tpu.memory_space<vmem>>, vector<1x128x128xbf16>
    %46 = vector.shape_cast %45 : vector<1x128x128xbf16> to vector<128x128xbf16>
    %cst_32 = arith.constant dense<0.000000e+00> : vector<8x128xf32>
    %47 = tpu.matmul %44, %46, %cst_32 {dimension_numbers = #tpu.dot_dimension_numbers<[1], [0], [0], [1], [0, 0, 1, 1], [], []>} : vector<8x128xbf16>, vector<128x128xbf16>, vector<8x128xf32> -> vector<8x128xf32>
    %c4_33 = arith.constant 4 : index
    %c0_34 = arith.constant 0 : index
    %c0_35 = arith.constant 0 : index
    %48 = vector.load %arg5[%c4_33, %c0_34, %c0_35] : memref<6x1x128xf32, #tpu.memory_space<vmem>>, vector<1x1x128xf32>
    %49 = vector.shape_cast %48 : vector<1x1x128xf32> to vector<1x128xf32>
    %50 = vector.broadcast %49 : vector<1x128xf32> to vector<8x128xf32>
    %51 = arith.addf %47, %50 : vector<8x128xf32>
    %52 = math.tanh %51 : vector<8x128xf32>
    %53 = arith.truncf %52 : vector<8x128xf32> to vector<8x128xbf16>
    %c5 = arith.constant 5 : index
    %c0_36 = arith.constant 0 : index
    %c0_37 = arith.constant 0 : index
    %54 = vector.load %arg4[%c5, %c0_36, %c0_37] : memref<6x128x128xbf16, #tpu.memory_space<vmem>>, vector<1x128x128xbf16>
    %55 = vector.shape_cast %54 : vector<1x128x128xbf16> to vector<128x128xbf16>
    %cst_38 = arith.constant dense<0.000000e+00> : vector<8x128xf32>
    %56 = tpu.matmul %53, %55, %cst_38 {dimension_numbers = #tpu.dot_dimension_numbers<[1], [0], [0], [1], [0, 0, 1, 1], [], []>} : vector<8x128xbf16>, vector<128x128xbf16>, vector<8x128xf32> -> vector<8x128xf32>
    %c5_39 = arith.constant 5 : index
    %c0_40 = arith.constant 0 : index
    %c0_41 = arith.constant 0 : index
    %57 = vector.load %arg5[%c5_39, %c0_40, %c0_41] : memref<6x1x128xf32, #tpu.memory_space<vmem>>, vector<1x1x128xf32>
    %58 = vector.shape_cast %57 : vector<1x1x128xf32> to vector<1x128xf32>
    %59 = vector.broadcast %58 : vector<1x128xf32> to vector<8x128xf32>
    %60 = arith.addf %56, %59 : vector<8x128xf32>
    %61 = arith.truncf %60 : vector<8x128xf32> to vector<8x128xbf16>
    %c0_42 = arith.constant 0 : index
    %c0_43 = arith.constant 0 : index
    %62 = vector.load %arg6[%c0_42, %c0_43] : memref<8x128xbf16, #tpu.memory_space<vmem>>, vector<8x128xbf16>
    tpu.vector_store %arg6[%c0_42, %c0_43], %61 {strides = array<i32>} : memref<8x128xbf16, #tpu.memory_space<vmem>>, vector<8x128xbf16>,
    return
  }
  func.func @transform_0(%arg0: i32) -> (i32, i32) {
    %c0_i32 = arith.constant 0 : i32
    %c0_i32_0 = arith.constant 0 : i32
    return %arg0, %c0_i32 : i32, i32
  }
  func.func @transform_1(%arg0: i32) -> (i32, i32) {
    %c0_i32 = arith.constant 0 : i32
    %c0_i32_0 = arith.constant 0 : i32
    %c0_i32_1 = arith.constant 0 : i32
    return %c0_i32, %c0_i32_0 : i32, i32
  }
  func.func @transform_2(%arg0: i32) -> (i32, i32) {
    %c0_i32 = arith.constant 0 : i32
    %c0_i32_0 = arith.constant 0 : i32
    %c0_i32_1 = arith.constant 0 : i32
    return %c0_i32, %c0_i32_0 : i32, i32
  }
  func.func @transform_3(%arg0: i32) -> (i32, i32, i32) {
    %c0_i32 = arith.constant 0 : i32
    %c0_i32_0 = arith.constant 0 : i32
    %c0_i32_1 = arith.constant 0 : i32
    %c0_i32_2 = arith.constant 0 : i32
    return %c0_i32, %c0_i32_0, %c0_i32_1 : i32, i32, i32
  }
  func.func @transform_4(%arg0: i32) -> (i32, i32, i32) {
    %c0_i32 = arith.constant 0 : i32
    %c0_i32_0 = arith.constant 0 : i32
    %c0_i32_1 = arith.constant 0 : i32
    %c0_i32_2 = arith.constant 0 : i32
    return %c0_i32, %c0_i32_0, %c0_i32_1 : i32, i32, i32
  }
  func.func @transform_5(%arg0: i32) -> (i32, i32) {
    %c0_i32 = arith.constant 0 : i32
    %c0_i32_0 = arith.constant 0 : i32
    return %arg0, %c0_i32 : i32, i32
  }
}

</mosaic_0001>

<bundles_post_ra>
// kernel: tpu_custom_call.1
= control target key start
LH: loop header
LB: loop body
LE: loop exit
PB: predicated region body
PF: predicated region fallthrough
CT: control target
= control target key end

     0   :  { %10 = vsyncpa [#allocation3], 0  ;;  %s2209_s0 = inlined_call_operand.hbm [shape: f32[2,784], index: 0, kind: input, shape index: {}]   ;;  %s2210_s1 = inlined_call_operand.hbm [shape: bf16[784,128], index: 1, kind: input, shape index: {}]   ;;  %s2211_s2 = inlined_call_operand.vmem [shape: f32[1,128], index: 2, kind: input, shape index: {}]   ;;  %s2212_s3 = inlined_call_operand.hbm [shape: bf16[6,128,128], index: 3, kind: input, shape index: {}]   ;;  %s2213_s4 = inlined_call_operand.vmem [shape: f32[6,1,128], index: 4, kind: input, shape index: {}]   ;;  %s2214_s5 = inlined_call_operand.hbm [shape: bf16[2,128], index: 5, kind: output, shape index: {}]  }
   0x1   :  { %11 = vsyncpa [#allocation6], 0 }
   0x2   :  { %12 = vsyncpa [#allocation4], 0 }
   0x3   :  { %17 = vsyncadd [#allocation3], 672  ;;  %s2048_s18 = smov [#allocation5]  }
   0x4   :  { %s30_s19 = sshll.u32 %s2048_s18, 4  ;;  %s31_s19 = int_to_ptr.vmem [resolvable:$true] %s30_s19 }
   0x5   :  { %s1970_s20 = scalar_lea.vmem %s31_s19, 6272  ;;  %p1975_p1 = scmp.lt.s32.totalorder %s31_s19, %s31_s19 }
   0x6   :  { %p1971_p0 = scmp.ne.s32.totalorder %s31_s19, %s1970_s20  ;;  %p1976_p2 = scmp.lt.s32.totalorder %s1970_s20, %s1970_s20 }
   0x8   :  { %p1977_p3 = por %p1976_p2, %p1975_p1 }
   0xa   :  { %p1978_p4 = pnand %p1977_p3, %p1971_p0 }
   0xc   :  { %1981 = shalt.err (!%p1978_p4)
}
   0xd   :  { %s2049_s21 = smov 64   ;;  %s2050_s22 = smov 4  }
   0xe   :  { %36 = dma.hbm_to_vmem [thread:$0]  %s2210_s1, 6272, %s31_s19, [#allocation6], %s2049_s21, %s2049_s21, %s2050_s22  }
   0xf   :  { %s2051_s25 = smov [#allocation2]  }
  0x10   :  { %s18_s26 = sshll.u32 %s2051_s25, 4  ;;  %s19_s26 = int_to_ptr.vmem [resolvable:$true] %s18_s26 }
  0x11   :  { %s1990_s27 = scalar_lea.vmem %s19_s26, 224  ;;  %s1994_s28 = scalar_lea.vmem %s19_s26, 896 }
  0x12   :  { %p1991_p5 = scmp.ne.s32.totalorder %s19_s26, %s1990_s27  ;;  %p1995_p6 = scmp.lt.s32.totalorder %s19_s26, %s19_s26 }
  0x13   :  { %p1996_p7 = scmp.lt.s32.totalorder %s1994_s28, %s1990_s27 }
  0x15   :  { %p1997_p8 = por %p1996_p7, %p1995_p6 }
  0x17   :  { %p1998_p9 = pnand %p1997_p8, %p1991_p5 }
  0x19   :  { %2001 = shalt.err (!%p1998_p9)
}
  0x1a   :  { %s2052_s29 = smov 224   ;;  %s2053_s30 = smov 14  }
  0x1b   :  { %24 = dma.hbm_to_vmem [thread:$0]  %s2209_s0, 224, %s19_s26, [#allocation3], %s2052_s29, %s2052_s29, %s2053_s30  }
  0x1c   :  { %s2054_s8 = smov [#allocation7]  }
  0x1d   :  { %s44_s9 = sshll.u32 %s2054_s8, 4  ;;  %s45_s9 = int_to_ptr.vmem [resolvable:$true] %s44_s9 }
  0x1e   :  { %s2010_s1 = scalar_lea.vmem %s45_s9, 6144  ;;  %p2015_p11 = scmp.lt.s32.totalorder %s45_s9, %s45_s9 }
  0x1f   :  { %p2011_p10 = scmp.ne.s32.totalorder %s45_s9, %s2010_s1  ;;  %p2016_p12 = scmp.lt.s32.totalorder %s2010_s1, %s2010_s1 }
  0x21   :  { %p2017_p13 = por %p2016_p12, %p2015_p11 }
  0x23   :  { %p2018_p0 = pnand %p2017_p13, %p2011_p10 }
  0x25   :  { %2021 = shalt.err (!%p2018_p0)
}
  0x26   :  { %50 = dma.hbm_to_vmem [thread:$0]  %s2212_s3, 6144, %s45_s9, [#allocation6], %s2049_s21, %s2049_s21, %s2050_s22  }
  0x27   :  { %2042 = dma.done.wait [#allocation3], 896  }
  0x28   :  { %2043 = vsyncadd [#allocation3], 4294966400 }
  0x29   :  { %2044 = dma.done.wait [#allocation6], 12416  }
  0x2a   :  { %2045 = vsyncadd [#allocation6], 4294954880  ;;  %v1841_v0 = vld [vmem:[#allocation5 + $0x78] sm:$0xff]   ;;  %v1845_v4 = vld [vmem:[#allocation5 + $0x70] sm:$0xff]   ;;  %v2055_v23 = vmov 1983009808   ;;  %v86_v25 = vlaneseq }
  0x2b   :  { %v1842_v1 = vld [vmem:[#allocation5 + $0x38] sm:$0xff]   ;;  %1579 = vmatprep.subr.bf16.mxu0 %v1841_v0  ;;  %v1846_v5 = vld [vmem:[#allocation5 + $0x30] sm:$0xff]   ;;  %v1849_v8 = vld [vmem:[#allocation5 + $0x68] sm:$0xff]   ;;  %v84_v24 = vunpack.c.l.s4 %v2055_v23  ;;  %v2056_v47 = vmov 0.0   ;;  %vm2057_vm0 = vmmov 0   ;;  %vm563_vm1 = vcmask 130048  }
  0x2c   :  { %v1843_v2 = vld [vmem:[#allocation5 + $0xf8] sm:$0xff]   ;;  %1580 = vmatpush3.bf16.msra.mxu0 %v1842_v1  ;;  %v1847_v6 = vld [vmem:[#allocation5 + $0xf0] sm:$0xff]   ;;  %v1850_v9 = vld [vmem:[#allocation5 + $0x28] sm:$0xff]   ;;  %v2107_v31 = vshrl.u32 %v86_v25, 7 }
  0x2d   :  { %v1844_v3 = vld [vmem:[#allocation5 + $0xb8] sm:$0xff]   ;;  %1601 = vmatprep.subr.bf16.mxu1 %v1843_v2  ;;  %1581 = vmatprep.subr.bf16.mxu0 %v1845_v4  ;;  %v1848_v7 = vld [vmem:[#allocation5 + $0xb0] sm:$0xff]   ;;  %v1851_v10 = vld [vmem:[#allocation5 + $0xe8] sm:$0xff]   ;;  %v85_v30 = vunpack.c.0.s8 %v84_v24 }
  0x2e   :  { %1602 = vmatpush3.bf16.msra.mxu1 %v1844_v3  ;;  %v1852_v11 = vld [vmem:[#allocation5 + $0xa8] sm:$0xff]   ;;  %v1853_v12 = vld [vmem:[#allocation5 + $0x60] sm:$0xff]   ;;  %v1857_v16 = vld [vmem:[#allocation5 + $0x58] sm:$0xff]  }
  0x2f   :  { %1603 = vmatprep.subr.bf16.mxu1 %v1847_v6  ;;  %v1854_v13 = vld [vmem:[#allocation5 + $0x20] sm:$0xff]   ;;  %v1858_v17 = vld [vmem:[#allocation5 + $0x18] sm:$0xff]   ;;  %v1861_v20 = vld [vmem:[#allocation5 + $0x50] sm:$0xff]   ;;  %v2110_v36 = vsub.s32 %v85_v30, %v2107_v31 }
  0x30   :  { %1582 = vmatpush3.bf16.msra.mxu0 %v1846_v5  ;;  %v1855_v14 = vld [vmem:[#allocation5 + $0xe0] sm:$0xff]   ;;  %v1859_v18 = vld [vmem:[#allocation5 + $0xd8] sm:$0xff]   ;;  %v1862_v21 = vld [vmem:[#allocation5 + $0x10] sm:$0xff]  }
  0x31   :  { %1583 = vmatprep.subr.bf16.mxu0 %v1849_v8  ;;  %v1856_v15 = vld [vmem:[#allocation5 + $0xa0] sm:$0xff]   ;;  %v1860_v19 = vld [vmem:[#allocation5 + $0x98] sm:$0xff]   ;;  %v1863_v22 = vld [vmem:[#allocation5 + $0xd0] sm:$0xff]  }
  0x32   :  { %1604 = vmatpush3.bf16.msra.mxu1 %v1848_v7  ;;  %v1864_v26 = vld [vmem:[#allocation5 + $0x90] sm:$0xff]   ;;  %v1865_v27 = vld [vmem:[#allocation5 + $0x48] sm:$0xff]   ;;  %v1869_v33 = vld [vmem:[#allocation5 + $0x40] sm:$0xff]  }
  0x33   :  { %1605 = vmatprep.subr.bf16.mxu1 %v1851_v10  ;;  %v1866_v28 = vld [vmem:[#allocation5 + $0x8] sm:$0xff]   ;;  %v1870_v34 = vld [vmem:[#allocation5] sm:$0xff]   ;;  %v1877_v42 = vld [vmem:[#allocation5 + $0x178] sm:$0xff]  }
  0x34   :  { %1584 = vmatpush3.bf16.msra.mxu0 %v1850_v9  ;;  %v1867_v29 = vld [vmem:[#allocation5 + $0xc8] sm:$0xff]   ;;  %v1871_v35 = vld [vmem:[#allocation5 + $0xc0] sm:$0xff]   ;;  %v1880_v52 = vld [vmem:[#allocation5 + $0x138] sm:$0xff]  }
  0x35   :  { %1585 = vmatprep.subr.bf16.mxu0 %v1853_v12  ;;  %v1868_v32 = vld [vmem:[#allocation5 + $0x88] sm:$0xff]   ;;  %v1874_v38 = vld [vmem:[#allocation2 + $0x1c] ss:$14 sps:$4 sm:$0xff]   ;;  %v1887_v63 = vld [vmem:[#allocation5 + $0x158] sm:$0xff]  }
  0x36   :  { %1606 = vmatpush3.bf16.msra.mxu1 %v1852_v11  ;;  %v1872_v37 = vld [vmem:[#allocation2] ss:$14 sps:$4 sm:$0xff]   ;;  %v1876_v39 = vld [vmem:[#allocation5 + $0x80] sm:$0xff]   ;;  %v103_v41 = vrot.slane %v1874_v38, %v2110_v36  ;;  %v1878_v43 = vld [vmem:[#allocation2 + $0x4] ss:$14 sps:$4 sm:$0xff]  }
  0x37   :  { %1607 = vmatprep.subr.bf16.mxu1 %v1855_v14  ;;  %v89_v40 = vrot.slane %v1872_v37, %v2110_v36  ;;  %v1879_v44 = vld [vmem:[#allocation2 + $0x20] ss:$14 sps:$4 sm:$0xff]   ;;  %v96_v48 = vrot.slane %v1878_v43, %v2110_v36  ;;  %v1885_v61 = vld [vmem:[#allocation5 + $0x160] sm:$0xff]   ;;  %v1899_v5 = vld [vmem:[#allocation2 + $0x24] ss:$14 sps:$4 sm:$0xff]  }
  0x38   :  { %1586 = vmatpush3.bf16.msra.mxu0 %v1854_v13  ;;  %v110_v49 = vrot.slane %v1879_v44, %v2110_v36  ;;  %v1881_v55 = vld [vmem:[#allocation5 + $0x170] sm:$0xff]   ;;  %v1883_v59 = vld [vmem:[#allocation5 + $0x168] sm:$0xff]   ;;  %v1886_v62 = vld [vmem:[#allocation5 + $0x120] sm:$0xff]   ;;  %v139_v10 = vrot.slane %v1899_v5, %v2110_v36 }
  0x39   :  { %1587 = vmatprep.subr.bf16.mxu0 %v1857_v16  ;;  %v112_v45 = vcombine.high %v89_v40, %v103_v41  ;;  %v111_v46 = vcombine.low %v89_v40, %v103_v41  ;;  %v1882_v58 = vld [vmem:[#allocation5 + $0x130] sm:$0xff]   ;;  %v1884_v60 = vld [vmem:[#allocation5 + $0x128] sm:$0xff]   ;;  %v1895_v0 = vld [vmem:[#allocation5 + $0x180] sm:$0xff]  }
  0x3a   :  { %1608 = vmatpush3.bf16.msra.mxu1 %v1856_v15  ;;  %v114_v53 = vcombine.high %v96_v48, %v110_v49  ;;  %v113_v54 = vcombine.low %v96_v48, %v110_v49  ;;  %v1888_v1 = vld [vmem:[#allocation5 + $0x118] sm:$0xff]   ;;  %v1898_v3 = vld [vmem:[#allocation2 + $0xc] ss:$14 sps:$4 sm:$0x33]   ;;  %v1891_v12 = vld [vmem:[#allocation5 + $0x148] sm:$0xff]  }
  0x3b   :  { %1609 = vmatprep.subr.bf16.mxu1 %v1859_v18  ;;  %v158_v50 = vpack.c.bf16 %v112_v45, %v112_v45  ;;  %v157_v51 = vpack.c.bf16 %v111_v46, %v111_v46  ;;  %v1896_v2 = vld [vmem:[#allocation2 + $0x8] ss:$14 sps:$4 sm:$0xff]   ;;  %v132_v8 = vrot.slane %v1898_v3, %v2110_v36  ;;  %v1892_v15 = vld [vmem:[#allocation5 + $0x108] sm:$0xff]  }
  0x3c   :  { %1588 = vmatpush3.bf16.msra.mxu0 %v1858_v17  ;;  %v160_v56 = vpack.c.bf16 %v114_v53, %v114_v53  ;;  %v159_v57 = vpack.c.bf16 %v113_v54, %v113_v54  ;;  %v1889_v4 = vld [vmem:[#allocation5 + $0x150] sm:$0xff]   ;;  %v125_v7 = vrot.slane %v1896_v2, %v2110_v36  ;;  %v1893_v18 = vld [vmem:[#allocation5 + $0x140] sm:$0xff]   ;;  %v1903_v23 = vld [vmem:[#allocation7 + $0x30] sm:$0xff]  }
  0x3d   :  { %1589 = vmatprep.subr.bf16.mxu0 %v1861_v20  ;;  %599 = vmatprep.mubr.bf16.mxu0 %v158_v50  ;;  %v1901_v6 = vld [vmem:[#allocation2 + $0x28] ss:$14 sps:$4 sm:$0x33]   ;;  %v1905_v25 = vld [vmem:[#allocation7 + $0x20] sm:$0xff]   ;;  %v1910_v30 = vld [vmem:[#allocation7 + $0x78] sm:$0xff]  }
  0x3e   :  { %1610 = vmatpush3.bf16.msra.mxu1 %v1860_v19  ;;  %639 = vmatprep.mubr.bf16.mxu1 %v160_v56  ;;  %v1890_v9 = vld [vmem:[#allocation5 + $0x110] sm:$0xff]   ;;  %v146_v11 = vrot.slane %v1901_v6, %v2110_v36  ;;  %v148_v13 = vcombine.high %v125_v7, %v139_v10  ;;  %v1894_v19 = vld [vmem:[#allocation5 + $0x100] sm:$0xff]   ;;  %v147_v20 = vcombine.low %v125_v7, %v139_v10  ;;  %v1467_v46 = vld [vmem:[%s2211_s2] ss:$0 sm:$0xff] }
  0x3f   :  { %1611 = vmatprep.subr.bf16.mxu1 %v1863_v22  ;;  %v1902_v22 = vld [vmem:[#allocation7 + $0x38] sm:$0xff]   ;;  %v1904_v24 = vld [vmem:[#allocation7 + $0x28] sm:$0xff]   ;;  %v1919_v3 = vld [vmem:[#allocation7 + $0xb0] sm:$0xff]  }
  0x40   :  { %1590 = vmatpush3.bf16.msra.mxu0 %v1862_v21  ;;  %v149_v14 = vcombine.low %v132_v8, %v146_v11  ;;  %v162_v16 = vpack.c.bf16 %v148_v13, %v148_v13  ;;  %v161_v21 = vpack.c.bf16 %v147_v20, %v147_v20  ;;  %v1918_v2 = vld [vmem:[#allocation7 + $0xb8] sm:$0xff]   ;;  %v1518_v5 = vld [vmem:[%s2213_s4] ss:$0 sm:$0xff]  ;;  %v1928_v20 = vld [vmem:[#allocation7 + $0xe8] sm:$0xff]  }
  0x41   :  { %1591 = vmatprep.subr.bf16.mxu0 %v1865_v27  ;;  %v1907_v27 = vld [vmem:[#allocation7 + $0x10] sm:$0xff]   ;;  %v1921_v13 = vld [vmem:[#allocation7 + $0xa0] sm:$0xff]  }
  0x42   :  { %1612 = vmatpush3.bf16.msra.mxu1 %v1864_v26  ;;  %v163_v17 = vpack.c.bf16 %v149_v14, %v149_v14  ;;  %v1906_v26 = vld [vmem:[#allocation7 + $0x18] sm:$0xff]  }
  0x43   :  { %1613 = vmatprep.subr.bf16.mxu1 %v1867_v29  ;;  %v1909_v29 = vld [vmem:[#allocation7] sm:$0xff]   ;;  %v1922_v14 = vld [vmem:[#allocation7 + $0x98] sm:$0xff]  }
  0x44   :  { %1592 = vmatpush3.bf16.msra.mxu0 %v1866_v28  ;;  %v1908_v28 = vld [vmem:[#allocation7 + $0x8] sm:$0xff]  }
  0x45   :  { %1593 = vmatprep.subr.bf16.mxu0 %v1869_v33  ;;  %v1912_v33 = vld [vmem:[#allocation7 + $0x68] sm:$0xff]  }
  0x46   :  { %1614 = vmatpush3.bf16.msra.mxu1 %v1868_v32  ;;  %v1911_v32 = vld [vmem:[#allocation7 + $0x70] sm:$0xff]  }
  0x47   :  { %1615 = vmatprep.subr.bf16.mxu1 %v1871_v35 }
  0x48   :  { %1594 = vmatpush3.bf16.msra.mxu0 %v1870_v34 }
  0x49   :  { %1623 = vmatprep.subr.bf16.mxu0 %v1877_v42 }
  0x4a   :  { %1616 = vmatpush3.bf16.msra.mxu1 %v1876_v39 }
  0x4b   :  { %1701 = vmatprep.subr.bf16.mxu1 %v2056_v47  ;;  %600 = vmatmul.mubr.bf16.vlgmr.msra.gmra.mxu0 %v157_v51 }
  0x4c   :  { %1624 = vmatpush3.bf16.msra.mxu0 %v1880_v52  ;;  %679 = vmatprep.mubr.bf16.mxu0 %v162_v16  ;;  %v1924_v16 = vld [vmem:[#allocation7 + $0x88] sm:$0xff]  }
  0x4d   :  { %1625 = vmatprep.subr.bf16.mxu0 %v1881_v55  ;;  %640 = vmatmul.mubr.bf16.vlgmr.msra.gmra.mxu1 %v159_v57 }
  0x4e   :  { %1703 = vmatprep.mubr.msk.bf16.mxu1 %vm2057_vm0, %v2056_v47  ;;  %1702 = vmatpush3.bf16.msra.mxu1 %v1895_v0  ;;  %v1916_v0 = vld [vmem:[#allocation7 + $0x48] sm:$0xff]  }
  0x4f   :  { %1707 = vmatprep.subr.bf16.mxu1 %v2056_v47 }
  0x50   :  { %1626 = vmatpush3.bf16.msra.mxu0 %v1882_v58 }
  0x51   :  { %1627 = vmatprep.subr.bf16.mxu0 %v1883_v59 }
  0x54   :  { %1628 = vmatpush3.bf16.msra.mxu0 %v1884_v60 }
  0x55   :  { %1629 = vmatprep.subr.bf16.mxu0 %v1885_v61  ;;  %1704 = vmatmul.mubr.msk.bf16.vlgmr.msra.gmra.mxu1 %vm563_vm1, %v163_v17  ;;  %v1913_v61 = vld [vmem:[#allocation7 + $0x60] sm:$0xff]  }
  0x56   :  { %1723 = vmatprep.mubr.msk.bf16.mxu1 %vm2057_vm0, %v2056_v47  ;;  %1708 = vmatpush3.bf16.msra.mxu1 %v1902_v22  ;;  %v1925_v17 = vld [vmem:[#allocation7 + $0x80] sm:$0xff]  }
  0x57   :  { %1709 = vmatprep.subr.bf16.mxu1 %v2056_v47 }
  0x58   :  { %1630 = vmatpush3.bf16.msra.mxu0 %v1886_v62  ;;  %v1914_v62 = vld [vmem:[#allocation7 + $0x58] sm:$0xff]  }
  0x59   :  { %1631 = vmatprep.subr.bf16.mxu0 %v1887_v63  ;;  %v1915_v63 = vld [vmem:[#allocation7 + $0x50] sm:$0xff]  }
  0x5a   :  { %1710 = vmatpush3.bf16.msra.mxu1 %v1903_v23 }
  0x5b   :  { %1711 = vmatprep.subr.bf16.mxu1 %v2056_v47 }
  0x5c   :  { %1632 = vmatpush3.bf16.msra.mxu0 %v1888_v1  ;;  %v1917_v1 = vld [vmem:[#allocation7 + $0x40] sm:$0xff]  }
  0x5d   :  { %1633 = vmatprep.subr.bf16.mxu0 %v1889_v4  ;;  %v1920_v4 = vld [vmem:[#allocation7 + $0xa8] sm:$0xff]  }
  0x5e   :  { %1712 = vmatpush3.bf16.msra.mxu1 %v1904_v24 }
  0x5f   :  { %1713 = vmatprep.subr.bf16.mxu1 %v2056_v47 }
  0x60   :  { %1634 = vmatpush3.bf16.msra.mxu0 %v1890_v9 }
  0x61   :  { %1635 = vmatprep.subr.bf16.mxu0 %v1891_v12 }
  0x62   :  { %1714 = vmatpush3.bf16.msra.mxu1 %v1905_v25 }
  0x63   :  { %1715 = vmatprep.subr.bf16.mxu1 %v2056_v47 }
  0x64   :  { %1636 = vmatpush3.bf16.msra.mxu0 %v1892_v15  ;;  %v1923_v15 = vld [vmem:[#allocation7 + $0x90] sm:$0xff]  }
  0x65   :  { %1637 = vmatprep.subr.bf16.mxu0 %v1893_v18  ;;  %v1926_v18 = vld [vmem:[#allocation7 + $0xf8] sm:$0xff]  }
  0x66   :  { %1716 = vmatpush3.bf16.msra.mxu1 %v1906_v26 }
  0x67   :  { %1717 = vmatprep.subr.bf16.mxu1 %v2056_v47 }
  0x68   :  { %1638 = vmatpush3.bf16.msra.mxu0 %v1894_v19  ;;  %v1927_v19 = vld [vmem:[#allocation7 + $0xf0] sm:$0xff]  }
  0x69   :  { %1727 = vmatprep.subr.bf16.mxu0 %v2056_v47 }
  0x6a   :  { %1718 = vmatpush3.bf16.msra.mxu1 %v1907_v27 }
  0x6b   :  { %680 = vmatmul.mubr.bf16.vlgmr.msra.gmra.mxu0 %v161_v21  ;;  %1719 = vmatprep.subr.bf16.mxu1 %v2056_v47  ;;  %v1528_v21 = vld [vmem:[%s2213_s4 + $0x1] ss:$0 sm:$0xff] }
  0x6c   :  { %1743 = vmatprep.mubr.msk.bf16.mxu0 %vm2057_vm0, %v2056_v47  ;;  %1728 = vmatpush3.bf16.msra.mxu0 %v1910_v30  ;;  %v1930_v30 = vld [vmem:[#allocation7 + $0xd8] sm:$0xff]  }
  0x6d   :  { %1729 = vmatprep.subr.bf16.mxu0 %v2056_v47 }
  0x6e   :  { %1720 = vmatpush3.bf16.msra.mxu1 %v1908_v28 }
  0x6f   :  { %1721 = vmatprep.subr.bf16.mxu1 %v2056_v47 }
  0x70   :  { %1730 = vmatpush3.bf16.msra.mxu0 %v1911_v32  ;;  %v1931_v32 = vld [vmem:[#allocation7 + $0xd0] sm:$0xff]  }
  0x71   :  { %1731 = vmatprep.subr.bf16.mxu0 %v2056_v47 }
  0x72   :  { %1722 = vmatpush3.bf16.msra.mxu1 %v1909_v29  ;;  %v1929_v29 = vld [vmem:[#allocation7 + $0xe0] sm:$0xff]  }
  0x73   :  { %1747 = vmatprep.subr.bf16.mxu1 %v2056_v47 }
  0x74   :  { %1732 = vmatpush3.bf16.msra.mxu0 %v1912_v33  ;;  %v1932_v33 = vld [vmem:[#allocation7 + $0xc8] sm:$0xff]  }
  0x75   :  { %1733 = vmatprep.subr.bf16.mxu0 %v2056_v47 }
  0x78   :  { %1734 = vmatpush3.bf16.msra.mxu0 %v1913_v61 }
  0x79   :  { %1735 = vmatprep.subr.bf16.mxu0 %v2056_v47 }
  0x7c   :  { %1736 = vmatpush3.bf16.msra.mxu0 %v1914_v62 }
  0x7d   :  { %1737 = vmatprep.subr.bf16.mxu0 %v2056_v47 }
  0x80   :  { %1738 = vmatpush3.bf16.msra.mxu0 %v1915_v63  ;;  %v1945_v63 = vld [vmem:[#allocation7 + $0x160] sm:$0xff]  }
  0x81   :  { %1739 = vmatprep.subr.bf16.mxu0 %v2056_v47 }
  0x84   :  { %1740 = vmatpush3.bf16.msra.mxu0 %v1916_v0  ;;  %v1946_v0 = vld [vmem:[#allocation7 + $0x158] sm:$0xff]  }
  0x85   :  { %1741 = vmatprep.subr.bf16.mxu0 %v2056_v47 }
  0x88   :  { %1742 = vmatpush3.bf16.msra.mxu0 %v1917_v1  ;;  %v1947_v1 = vld [vmem:[#allocation7 + $0x150] sm:$0xff]  }
  0x89   :  { %1767 = vmatprep.subr.bf16.mxu0 %v2056_v47 }
 0x10b   :  { %v1595_v34 = vpop.f32.mrf.mxu0 }
 0x10d   :  { %v1596_v35 = vpop.f32.mrf.mxu0  ;;  %v1617_v36 = vpop.f32.mrf.mxu1 }
 0x10e   :  { %v1597_v45 = vadd.f32 %v1596_v35, %v1595_v34  ;;  %v1933_v34 = vld [vmem:[#allocation7 + $0xc0] sm:$0xff]   ;;  %v1934_v35 = vld [vmem:[#allocation7 + $0x138] sm:$0xff]  }
 0x10f   :  { %v1598_v37 = vpop.f32.mrf.mxu0  ;;  %v1618_v38 = vpop.f32.mrf.mxu1 }
 0x110   :  { %v602_v49 = vadd.f32 %v1597_v45, %v1467_v46  ;;  %v1619_v50 = vadd.f32 %v1618_v38, %v1617_v36  ;;  %v1935_v36 = vld [vmem:[#allocation7 + $0x130] sm:$0xff]   ;;  %v1936_v37 = vld [vmem:[#allocation7 + $0x128] sm:$0xff]   ;;  %v1538_v38 = vld [vmem:[%s2213_s4 + $0x2] ss:$0 sm:$0xff] }
 0x111   :  { %v1599_v39 = vpop.f32.mrf.mxu0  ;;  %v1620_v40 = vpop.f32.mrf.mxu1  ;;  %v1937_v46 = vld [vmem:[#allocation7 + $0x120] sm:$0xff]  }
 0x112   :  { %v642_v53 = vadd.f32 %v1619_v50, %v602_v49  ;;  %v1939_v49 = vld [vmem:[#allocation7 + $0x110] sm:$0xff]   ;;  %v1940_v50 = vld [vmem:[#allocation7 + $0x108] sm:$0xff]  }
 0x113   :  { %v1621_v41 = vpop.f32.mrf.mxu1 }
 0x115   :  { %v721_v42 = vpop.f32.mrf.mxu1 }
 0x117   :  { %v1705_v43 = vpop.f32.mrf.mxu1 }
 0x119   :  { %v724_v44 = vpop.f32.mrf.mxu1 }
 0x11b   :  { %v1706_v48 = vpop.f32.mrf.mxu1 }
 0x11c   :  { %v1938_v48 = vld [vmem:[#allocation7 + $0x118] sm:$0xff]  }
 0x12b   :  { %v1639_v51 = vpop.f32.mrf.mxu0 }
 0x12d   :  { %v1640_v52 = vpop.f32.mrf.mxu0 }
 0x12e   :  { %v1641_v54 = vadd.f32 %v1640_v52, %v1639_v51  ;;  %v1941_v51 = vld [vmem:[#allocation7 + $0x100] sm:$0xff]   ;;  %v1942_v52 = vld [vmem:[#allocation7 + $0x178] sm:$0xff]  }
 0x12f   :  { %v1642_v55 = vpop.f32.mrf.mxu0 }
 0x130   :  { %v682_v56 = vadd.f32 %v1641_v54, %v642_v53  ;;  %v1943_v53 = vld [vmem:[#allocation7 + $0x170] sm:$0xff]   ;;  %v1944_v54 = vld [vmem:[#allocation7 + $0x168] sm:$0xff]   ;;  %v1548_v55 = vld [vmem:[%s2213_s4 + $0x3] ss:$0 sm:$0xff] }
 0x131   :  { %v1643_v57 = vpop.f32.mrf.mxu0 }
 0x132   :  { %v722_v58 = vadd.f32 %v721_v42, %v682_v56 }
 0x134   :  { %1950 = vtanh.f32 %v722_v58 }
 0x141   :  { %v1951_v59 = vpop.eup %1950 }
 0x142   :  { %v728_v60 = vpack.c.bf16 %v1951_v59, %v1951_v59 }
 0x144   :  { %1724 = vmatmul.mubr.bf16.vlgmr.msra.gmra.mxu1 %v728_v60 }
 0x145   :  { %1763 = vmatprep.mubr.msk.bf16.mxu1 %vm2057_vm0, %v2056_v47  ;;  %1748 = vmatpush3.bf16.msra.mxu1 %v1918_v2  ;;  %v1948_v2 = vld [vmem:[#allocation7 + $0x148] sm:$0xff]  }
 0x146   :  { %1749 = vmatprep.subr.bf16.mxu1 %v2056_v47 }
 0x149   :  { %1750 = vmatpush3.bf16.msra.mxu1 %v1919_v3  ;;  %v1949_v3 = vld [vmem:[#allocation7 + $0x140] sm:$0xff]  }
 0x14a   :  { %1751 = vmatprep.subr.bf16.mxu1 %v2056_v47 }
 0x14d   :  { %1752 = vmatpush3.bf16.msra.mxu1 %v1920_v4  ;;  %v1558_v4 = vld [vmem:[%s2213_s4 + $0x4] ss:$0 sm:$0xff] }
 0x14e   :  { %1753 = vmatprep.subr.bf16.mxu1 %v2056_v47 }
 0x151   :  { %1754 = vmatpush3.bf16.msra.mxu1 %v1921_v13 }
 0x152   :  { %1755 = vmatprep.subr.bf16.mxu1 %v2056_v47 }
 0x155   :  { %1756 = vmatpush3.bf16.msra.mxu1 %v1922_v14 }
 0x156   :  { %1757 = vmatprep.subr.bf16.mxu1 %v2056_v47 }
 0x159   :  { %1758 = vmatpush3.bf16.msra.mxu1 %v1923_v15 }
 0x15a   :  { %1759 = vmatprep.subr.bf16.mxu1 %v2056_v47 }
 0x15d   :  { %1760 = vmatpush3.bf16.msra.mxu1 %v1924_v16 }
 0x15e   :  { %1761 = vmatprep.subr.bf16.mxu1 %v2056_v47 }
 0x161   :  { %1762 = vmatpush3.bf16.msra.mxu1 %v1925_v17 }
 0x162   :  { %1787 = vmatprep.subr.bf16.mxu1 %v2056_v47 }
 0x204   :  { %v834_v6 = vpop.f32.mrf.mxu1 }
 0x205   :  { %v835_v7 = vadd.f32 %v1518_v5, %v834_v6 }
 0x206   :  { %v1725_v8 = vpop.f32.mrf.mxu1 }
 0x207   :  { %1952 = vtanh.f32 %v835_v7 }
 0x208   :  { %v837_v9 = vpop.f32.mrf.mxu1 }
 0x20a   :  { %v1726_v10 = vpop.f32.mrf.mxu1 }
 0x214   :  { %v1953_v11 = vpop.eup %1952 }
 0x215   :  { %v841_v12 = vpack.c.bf16 %v1953_v11, %v1953_v11 }
 0x217   :  { %1744 = vmatmul.mubr.bf16.vlgmr.msra.gmra.mxu0 %v841_v12  ;;  %v2058_v12 = vmov 1966171168  }
 0x218   :  { %1783 = vmatprep.mubr.msk.bf16.mxu0 %vm2057_vm0, %v2056_v47  ;;  %1768 = vmatpush3.bf16.msra.mxu0 %v1926_v18  ;;  %v1418_v13 = vunpack.c.l.s4 %v2058_v12 }
 0x219   :  { %1769 = vmatprep.subr.bf16.mxu0 %v2056_v47 }
 0x21a   :  { %v1419_v14 = vunpack.c.0.s8 %v1418_v13 }
 0x21c   :  { %1770 = vmatpush3.bf16.msra.mxu0 %v1927_v19  ;;  %v1422_v17 = vsub.s32 %v1419_v14, %v2107_v31 }
 0x21d   :  { %1771 = vmatprep.subr.bf16.mxu0 %v2056_v47 }
 0x220   :  { %1772 = vmatpush3.bf16.msra.mxu0 %v1928_v20 }
 0x221   :  { %1773 = vmatprep.subr.bf16.mxu0 %v2056_v47 }
 0x224   :  { %1774 = vmatpush3.bf16.msra.mxu0 %v1929_v29 }
 0x225   :  { %1775 = vmatprep.subr.bf16.mxu0 %v2056_v47 }
 0x228   :  { %1776 = vmatpush3.bf16.msra.mxu0 %v1930_v30 }
 0x229   :  { %1777 = vmatprep.subr.bf16.mxu0 %v2056_v47 }
 0x22c   :  { %1778 = vmatpush3.bf16.msra.mxu0 %v1931_v32 }
 0x22d   :  { %1779 = vmatprep.subr.bf16.mxu0 %v2056_v47 }
 0x230   :  { %1780 = vmatpush3.bf16.msra.mxu0 %v1932_v33 }
 0x231   :  { %1781 = vmatprep.subr.bf16.mxu0 %v2056_v47 }
 0x234   :  { %1782 = vmatpush3.bf16.msra.mxu0 %v1933_v34 }
 0x235   :  { %1807 = vmatprep.subr.bf16.mxu0 %v2056_v47 }
 0x2d7   :  { %v949_v22 = vpop.f32.mrf.mxu0 }
 0x2d8   :  { %v950_v23 = vadd.f32 %v1528_v21, %v949_v22 }
 0x2d9   :  { %v1745_v24 = vpop.f32.mrf.mxu0 }
 0x2da   :  { %1954 = vtanh.f32 %v950_v23 }
 0x2db   :  { %v952_v25 = vpop.f32.mrf.mxu0 }
 0x2dd   :  { %v1746_v26 = vpop.f32.mrf.mxu0 }
 0x2e7   :  { %v1955_v27 = vpop.eup %1954 }
 0x2e8   :  { %v956_v28 = vpack.c.bf16 %v1955_v27, %v1955_v27 }
 0x2ea   :  { %1764 = vmatmul.mubr.bf16.vlgmr.msra.gmra.mxu1 %v956_v28 }
 0x2eb   :  { %1803 = vmatprep.mubr.msk.bf16.mxu1 %vm2057_vm0, %v2056_v47  ;;  %1788 = vmatpush3.bf16.msra.mxu1 %v1934_v35 }
 0x2ec   :  { %1789 = vmatprep.subr.bf16.mxu1 %v2056_v47 }
 0x2ef   :  { %1790 = vmatpush3.bf16.msra.mxu1 %v1935_v36 }
 0x2f0   :  { %1791 = vmatprep.subr.bf16.mxu1 %v2056_v47 }
 0x2f3   :  { %1792 = vmatpush3.bf16.msra.mxu1 %v1936_v37 }
 0x2f4   :  { %1793 = vmatprep.subr.bf16.mxu1 %v2056_v47 }
 0x2f7   :  { %1794 = vmatpush3.bf16.msra.mxu1 %v1937_v46 }
 0x2f8   :  { %1795 = vmatprep.subr.bf16.mxu1 %v2056_v47 }
 0x2fb   :  { %1796 = vmatpush3.bf16.msra.mxu1 %v1938_v48 }
 0x2fc   :  { %1797 = vmatprep.subr.bf16.mxu1 %v2056_v47 }
 0x2ff   :  { %1798 = vmatpush3.bf16.msra.mxu1 %v1939_v49 }
 0x300   :  { %1799 = vmatprep.subr.bf16.mxu1 %v2056_v47 }
 0x303   :  { %1800 = vmatpush3.bf16.msra.mxu1 %v1940_v50 }
 0x304   :  { %1801 = vmatprep.subr.bf16.mxu1 %v2056_v47 }
 0x307   :  { %1802 = vmatpush3.bf16.msra.mxu1 %v1941_v51 }
 0x3aa   :  { %v1064_v39 = vpop.f32.mrf.mxu1 }
 0x3ab   :  { %v1065_v40 = vadd.f32 %v1538_v38, %v1064_v39 }
 0x3ac   :  { %v1765_v41 = vpop.f32.mrf.mxu1 }
 0x3ad   :  { %1956 = vtanh.f32 %v1065_v40 }
 0x3ae   :  { %v1067_v42 = vpop.f32.mrf.mxu1 }
 0x3b0   :  { %v1766_v43 = vpop.f32.mrf.mxu1 }
 0x3ba   :  { %v1957_v44 = vpop.eup %1956 }
 0x3bb   :  { %v1071_v45 = vpack.c.bf16 %v1957_v44, %v1957_v44 }
 0x3bd   :  { %1784 = vmatmul.mubr.bf16.vlgmr.msra.gmra.mxu0 %v1071_v45 }
 0x3be   :  { %1823 = vmatprep.mubr.msk.bf16.mxu0 %vm2057_vm0, %v2056_v47  ;;  %1808 = vmatpush3.bf16.msra.mxu0 %v1942_v52 }
 0x3bf   :  { %1809 = vmatprep.subr.bf16.mxu0 %v2056_v47 }
 0x3c2   :  { %1810 = vmatpush3.bf16.msra.mxu0 %v1943_v53 }
 0x3c3   :  { %1811 = vmatprep.subr.bf16.mxu0 %v2056_v47 }
 0x3c6   :  { %1812 = vmatpush3.bf16.msra.mxu0 %v1944_v54 }
 0x3c7   :  { %1813 = vmatprep.subr.bf16.mxu0 %v2056_v47 }
 0x3ca   :  { %1814 = vmatpush3.bf16.msra.mxu0 %v1945_v63 }
 0x3cb   :  { %1815 = vmatprep.subr.bf16.mxu0 %v2056_v47 }
 0x3ce   :  { %1816 = vmatpush3.bf16.msra.mxu0 %v1946_v0 }
 0x3cf   :  { %1817 = vmatprep.subr.bf16.mxu0 %v2056_v47 }
 0x3d2   :  { %1818 = vmatpush3.bf16.msra.mxu0 %v1947_v1 }
 0x3d3   :  { %1819 = vmatprep.subr.bf16.mxu0 %v2056_v47 }
 0x3d6   :  { %1820 = vmatpush3.bf16.msra.mxu0 %v1948_v2 }
 0x3d7   :  { %1821 = vmatprep.subr.bf16.mxu0 %v2056_v47  ;;  %v1568_v47 = vld [vmem:[%s2213_s4 + $0x5] ss:$0 sm:$0xff] }
 0x3da   :  { %1822 = vmatpush3.bf16.msra.mxu0 %v1949_v3 }
 0x47d   :  { %v1179_v56 = vpop.f32.mrf.mxu0 }
 0x47e   :  { %v1180_v57 = vadd.f32 %v1548_v55, %v1179_v56 }
 0x47f   :  { %v1785_v58 = vpop.f32.mrf.mxu0 }
 0x480   :  { %1958 = vtanh.f32 %v1180_v57 }
 0x481   :  { %v1182_v59 = vpop.f32.mrf.mxu0 }
 0x483   :  { %v1786_v60 = vpop.f32.mrf.mxu0 }
 0x48d   :  { %v1959_v61 = vpop.eup %1958 }
 0x48e   :  { %v1186_v62 = vpack.c.bf16 %v1959_v61, %v1959_v61 }
 0x490   :  { %1804 = vmatmul.mubr.bf16.vlgmr.msra.gmra.mxu1 %v1186_v62 }
 0x550   :  { %v1294_v5 = vpop.f32.mrf.mxu1 }
 0x551   :  { %v1295_v6 = vadd.f32 %v1558_v4, %v1294_v5 }
 0x552   :  { %v1805_v7 = vpop.f32.mrf.mxu1 }
 0x553   :  { %1960 = vtanh.f32 %v1295_v6 }
 0x554   :  { %v1297_v8 = vpop.f32.mrf.mxu1 }
 0x556   :  { %v1806_v9 = vpop.f32.mrf.mxu1 }
 0x560   :  { %v1961_v10 = vpop.eup %1960 }
 0x561   :  { %v1301_v11 = vpack.c.bf16 %v1961_v10, %v1961_v10 }
 0x563   :  { %1824 = vmatmul.mubr.bf16.vlgmr.msra.gmra.mxu0 %v1301_v11 }
 0x623   :  { %v1409_v15 = vpop.f32.mrf.mxu0 }
 0x624   :  { %v1410_v16 = vadd.f32 %v1568_v47, %v1409_v15 }
 0x625   :  { %v1825_v18 = vpop.f32.mrf.mxu0 }
 0x626   :  { %v1415_v19 = vpack.c.bf16 %v1410_v16, %v1410_v16 }
 0x627   :  { %v1412_v20 = vpop.f32.mrf.mxu0 }
 0x628   :  { %v1423_v21 = vrot.slane %v1415_v19, %v1422_v17 }
 0x629   :  { %v1826_v22 = vpop.f32.mrf.mxu0 }
 0x62a   :  { %v1424_v23 = vcombine.high %v1423_v21, %v1423_v21  ;;  %v1431_v24 = vrot.slane %v1423_v21, %v1422_v17  ;;  %1577 = vst.sshfl [vmem:[#allocation8] sm:$0x1 pattern:$0x73625140] %v1423_v21 }
 0x62c   :  { %v1438_v25 = vrot.slane %v1424_v23, %v1422_v17  ;;  %v1439_v26 = vcombine.high %v1431_v24, %v1431_v24  ;;  %1578 = vst.sshfl [vmem:[#allocation8 + $0x1] sm:$0x1 pattern:$0x73625140] %v1424_v23 }
 0x62e   :  { %v1440_v27 = vcombine.high %v1438_v25, %v1438_v25  ;;  %1447 = vst [vmem:[#allocation8 + $0x2] sm:$0x1] %v1439_v26 }
 0x630   :  { %1448 = vst [vmem:[#allocation8 + $0x3] sm:$0x1] %v1440_v27 }
 0x631   :  { %1453 = vsyncadd [#allocation4], 48  ;;  %s2059_s4 = smov [#allocation8]  }
 0x632   :  { %s1454_s23 = sshll.u32 %s2059_s4, 4  ;;  %s1455_s23 = int_to_ptr.vmem [resolvable:$true] %s1454_s23 }
 0x633   :  { %s2022_s24 = scalar_lea.vmem %s1455_s23, 16  ;;  %s2026_s25 = scalar_lea.vmem %s1455_s23, 64 }
 0x634   :  { %p2023_p1 = scmp.ne.s32.totalorder %s1455_s23, %s2022_s24  ;;  %p2027_p2 = scmp.lt.s32.totalorder %s1455_s23, %s1455_s23 }
 0x635   :  { %p2028_p3 = scmp.lt.s32.totalorder %s2026_s25, %s2022_s24 }
 0x637   :  { %p2029_p4 = por %p2028_p3, %p2027_p2 }
 0x639   :  { %p2030_p5 = pnand %p2029_p4, %p2023_p1 }
 0x63b   :  { %2033 = shalt.err (!%p2030_p5)
}
 0x63c   :  { %s2060_s26 = smov 16   ;;  %s2061_s27 = smov 1  }
 0x63d   :  { %1460 = dma.vmem_to_hbm [thread:$0]  %s1455_s23, 16, %s2214_s5, [#allocation4], %s2060_s26, %s2060_s26, %s2061_s27  }
 0x63e   :  { %2046 = dma.done.wait [#allocation4], 64  }
 0x63f   :  { %2047 = vsyncadd [#allocation4], 4294967232 }
 0x640   :  { %1464 = vsyncpa [#allocation3], 1 }
 0x641   :  { %1465 = vsyncpa [#allocation6], 1 }
 0x642   :  { %1466 = vsyncpa [#allocation4], 1 }

</bundles_post_ra>
